<compile_context>
chip_gen: v7x
topology: tpu7x:2x2x1
jax: 0.10.0
libtpu: 0.0.40
codegen_flags: <defaults>
</compile_context>

<pallas_src>
import functools

import numpy as np
import jax
import jax.numpy as jnp
from jax import lax
from jax.experimental import pallas as pl
from jax.experimental.pallas import tpu as pltpu


def make_variance_layer_params(patch_size=5, channels=1):
    """Deterministic parameter init, identical to VarianceLayer.__init__."""
    P, C = patch_size, channels
    mean_mask = np.ones((C, C, P, P), dtype=np.float32) / float(P * P)
    ones_mask = np.zeros((C, C, P, P), dtype=np.float32)
    ones_mask[:, :, P // 2, P // 2] = 1.0
    return jnp.asarray(mean_mask), jnp.asarray(ones_mask)


def _box_sum_valid(a, P):
    """Separable 'VALID' PxP box *sum* of a 2-D (H, W) array.

    2P shifted adds instead of P*P multiply-adds; the uniform 1/P^2 weight is
    applied once by the caller.
    """
    h, w = a.shape
    ho, wo = h - P + 1, w - P + 1
    # Horizontal pass (lane direction).
    row = a[:, 0:wo]
    for dj in range(1, P):
        row = row + a[:, dj:dj + wo]
    # Vertical pass (sublane direction).
    out = row[0:ho, :]
    for di in range(1, P):
        out = out + row[di:di + ho, :]
    return out


def _variance_kernel(x_ref, o_ref, *, C, H, W, P):
    # x_ref : VMEM block (1, C, H, W)   float32
    # o_ref : VMEM block (1, C, H2, W2) float32,  H2 = H - 2(P-1), W2 = W - 2(P-1)
    inv_p2 = 1.0 / float(P * P)
    c = P // 2
    h1, w1 = H - P + 1, W - P + 1

    # Channel sum (exact: every (oc, ic) mask slice is identical).
    xs = x_ref[0, 0]
    for ic in range(1, C):
        xs = xs + x_ref[0, ic]                       # (H, W)

    # conv(x, ones_mask) -> center slice; conv(x, mean_mask) -> box sum * 1/P^2.
    center = xs[c:c + h1, c:c + w1]                  # (h1, w1)
    mean1 = _box_sum_valid(xs, P) * inv_p2           # (h1, w1)
    e = center - mean1                               # Ex_E (same for every oc)
    sq = e * e

    # conv(Ex_E**2, mean_mask)[oc] = (C / P^2) * box_sum(e^2), identical per oc.
    out = _box_sum_valid(sq, P) * (float(C) * inv_p2)   # (H2, W2)

    # Write each output channel directly (no stack/concat relayout).
    for oc in range(C):
        o_ref[0, oc] = out


def variance_layer_forward(x, patch_size=5):
    """Pallas forward for VarianceLayer. x: (N, C, H, W) -> (N, C, H2, W2)."""
    N, C, H, W = x.shape
    P = patch_size
    H2, W2 = H - 2 * (P - 1), W - 2 * (P - 1)
    assert H2 > 0 and W2 > 0, "input spatial dims too small for two valid convs"

    kernel = functools.partial(_variance_kernel, C=C, H=H, W=W, P=P)
    return pl.pallas_call(
        kernel,
        out_shape=jax.ShapeDtypeStruct((N, C, H2, W2), jnp.float32),
        grid=(N,),
        in_specs=[pl.BlockSpec((1, C, H, W), lambda n: (n, 0, 0, 0))],
        out_specs=pl.BlockSpec((1, C, H2, W2), lambda n: (n, 0, 0, 0)),
        compiler_params=pltpu.CompilerParams(
            dimension_semantics=("parallel",),   # megacore-shard the batch on v7x
            vmem_limit_bytes=32 << 20,           # stay within v7x's smaller VMEM
        ),
    )(x.astype(jnp.float32))


def _reference_forward(x, mean_mask, ones_mask):
    """Pure-JAX reference identical to the PyTorch forward (valid conv, NCHW/OIHW)."""
    def conv(inp, w):
        return lax.conv_general_dilated(
            inp, w, window_strides=(1, 1), padding="VALID",
            dimension_numbers=("NCHW", "OIHW", "NCHW"))
    ex_e = conv(x, ones_mask) - conv(x, mean_mask)
    return conv(ex_e ** 2, mean_mask)


if __name__ == "__main__":
    key = jax.random.PRNGKey(0)

    # Default config (patch_size=5, channels=1) at a small shape.
    for channels in (1, 3):
        patch_size = 5
        N, H, W = 2, 16, 16
        mean_mask, ones_mask = make_variance_layer_params(patch_size, channels)
        key, sub = jax.random.split(key)
        x = jax.random.normal(sub, (N, channels, H, W), dtype=jnp.float32)

        out = variance_layer_forward(x, patch_size)
        out = jax.block_until_ready(out)

        ref = _reference_forward(x, mean_mask, ones_mask)
        assert out.shape == (N, channels,
                             H - 2 * (patch_size - 1), W - 2 * (patch_size - 1))
        np.testing.assert_allclose(np.asarray(out), np.asarray(ref),
                                   rtol=1e-4, atol=1e-5)

    print("KERNEL_OK")
</pallas_src>

<mosaic_0001>
module attributes {stable_mosaic.version = 11 : i64} {
  func.func @_variance_kernel(%arg0: i32, %arg1: memref<1x1x16x16xf32, #tpu.memory_space<vmem>>, %arg2: memref<1x1x8x8xf32, #tpu.memory_space<vmem>>) attributes {dimension_semantics = [#tpu.dimension_semantics<parallel>], iteration_bounds = array<i64: 2>, scalar_prefetch = 0 : i64, scratch_operands = 0 : i64, tpu.core_type = #tpu.core_type<tc>, window_params = [{transform_indices = @transform_0, window_bounds = array<i64: 1, 1, 16, 16>}, {transform_indices = @transform_1, window_bounds = array<i64: 1, 1, 8, 8>}]} {
    %c0 = arith.constant 0 : index
    %c0_0 = arith.constant 0 : index
    %c0_1 = arith.constant 0 : index
    %c0_2 = arith.constant 0 : index
    %0 = vector.load %arg1[%c0, %c0_0, %c0_1, %c0_2] : memref<1x1x16x16xf32, #tpu.memory_space<vmem>>, vector<1x1x16x16xf32>
    %1 = vector.shape_cast %0 : vector<1x1x16x16xf32> to vector<16x16xf32>
    %2 = vector.extract_strided_slice %1 {offsets = [2, 2], sizes = [12, 12], strides = [1, 1]} : vector<16x16xf32> to vector<12x12xf32>
    %3 = vector.extract_strided_slice %1 {offsets = [0, 0], sizes = [16, 12], strides = [1, 1]} : vector<16x16xf32> to vector<16x12xf32>
    %4 = vector.extract_strided_slice %1 {offsets = [0, 1], sizes = [16, 12], strides = [1, 1]} : vector<16x16xf32> to vector<16x12xf32>
    %5 = arith.addf %3, %4 : vector<16x12xf32>
    %6 = vector.extract_strided_slice %1 {offsets = [0, 2], sizes = [16, 12], strides = [1, 1]} : vector<16x16xf32> to vector<16x12xf32>
    %7 = arith.addf %5, %6 : vector<16x12xf32>
    %8 = vector.extract_strided_slice %1 {offsets = [0, 3], sizes = [16, 12], strides = [1, 1]} : vector<16x16xf32> to vector<16x12xf32>
    %9 = arith.addf %7, %8 : vector<16x12xf32>
    %10 = vector.extract_strided_slice %1 {offsets = [0, 4], sizes = [16, 12], strides = [1, 1]} : vector<16x16xf32> to vector<16x12xf32>
    %11 = arith.addf %9, %10 : vector<16x12xf32>
    %12 = vector.extract_strided_slice %11 {offsets = [0, 0], sizes = [12, 12], strides = [1, 1]} : vector<16x12xf32> to vector<12x12xf32>
    %13 = vector.extract_strided_slice %11 {offsets = [1, 0], sizes = [12, 12], strides = [1, 1]} : vector<16x12xf32> to vector<12x12xf32>
    %14 = arith.addf %12, %13 : vector<12x12xf32>
    %15 = vector.extract_strided_slice %11 {offsets = [2, 0], sizes = [12, 12], strides = [1, 1]} : vector<16x12xf32> to vector<12x12xf32>
    %16 = arith.addf %14, %15 : vector<12x12xf32>
    %17 = vector.extract_strided_slice %11 {offsets = [3, 0], sizes = [12, 12], strides = [1, 1]} : vector<16x12xf32> to vector<12x12xf32>
    %18 = arith.addf %16, %17 : vector<12x12xf32>
    %19 = vector.extract_strided_slice %11 {offsets = [4, 0], sizes = [12, 12], strides = [1, 1]} : vector<16x12xf32> to vector<12x12xf32>
    %20 = arith.addf %18, %19 : vector<12x12xf32>
    %cst = arith.constant 4.000000e-02 : f32
    %21 = vector.broadcast %cst : f32 to vector<12x12xf32>
    %22 = arith.mulf %20, %21 : vector<12x12xf32>
    %23 = arith.subf %2, %22 : vector<12x12xf32>
    %24 = arith.mulf %23, %23 : vector<12x12xf32>
    %25 = vector.extract_strided_slice %24 {offsets = [0, 0], sizes = [12, 8], strides = [1, 1]} : vector<12x12xf32> to vector<12x8xf32>
    %26 = vector.extract_strided_slice %24 {offsets = [0, 1], sizes = [12, 8], strides = [1, 1]} : vector<12x12xf32> to vector<12x8xf32>
    %27 = arith.addf %25, %26 : vector<12x8xf32>
    %28 = vector.extract_strided_slice %24 {offsets = [0, 2], sizes = [12, 8], strides = [1, 1]} : vector<12x12xf32> to vector<12x8xf32>
    %29 = arith.addf %27, %28 : vector<12x8xf32>
    %30 = vector.extract_strided_slice %24 {offsets = [0, 3], sizes = [12, 8], strides = [1, 1]} : vector<12x12xf32> to vector<12x8xf32>
    %31 = arith.addf %29, %30 : vector<12x8xf32>
    %32 = vector.extract_strided_slice %24 {offsets = [0, 4], sizes = [12, 8], strides = [1, 1]} : vector<12x12xf32> to vector<12x8xf32>
    %33 = arith.addf %31, %32 : vector<12x8xf32>
    %34 = vector.extract_strided_slice %33 {offsets = [0, 0], sizes = [8, 8], strides = [1, 1]} : vector<12x8xf32> to vector<8x8xf32>
    %35 = vector.extract_strided_slice %33 {offsets = [1, 0], sizes = [8, 8], strides = [1, 1]} : vector<12x8xf32> to vector<8x8xf32>
    %36 = arith.addf %34, %35 : vector<8x8xf32>
    %37 = vector.extract_strided_slice %33 {offsets = [2, 0], sizes = [8, 8], strides = [1, 1]} : vector<12x8xf32> to vector<8x8xf32>
    %38 = arith.addf %36, %37 : vector<8x8xf32>
    %39 = vector.extract_strided_slice %33 {offsets = [3, 0], sizes = [8, 8], strides = [1, 1]} : vector<12x8xf32> to vector<8x8xf32>
    %40 = arith.addf %38, %39 : vector<8x8xf32>
    %41 = vector.extract_strided_slice %33 {offsets = [4, 0], sizes = [8, 8], strides = [1, 1]} : vector<12x8xf32> to vector<8x8xf32>
    %42 = arith.addf %40, %41 : vector<8x8xf32>
    %cst_3 = arith.constant 4.000000e-02 : f32
    %43 = vector.broadcast %cst_3 : f32 to vector<8x8xf32>
    %44 = arith.mulf %42, %43 : vector<8x8xf32>
    %c0_4 = arith.constant 0 : index
    %c0_5 = arith.constant 0 : index
    %c0_6 = arith.constant 0 : index
    %c0_7 = arith.constant 0 : index
    %45 = vector.load %arg2[%c0_4, %c0_5, %c0_6, %c0_7] : memref<1x1x8x8xf32, #tpu.memory_space<vmem>>, vector<1x1x8x8xf32>
    %46 = vector.shape_cast %45 : vector<1x1x8x8xf32> to vector<8x8xf32>
    %47 = vector.shape_cast %44 : vector<8x8xf32> to vector<1x1x8x8xf32>
    tpu.vector_store %arg2[%c0_4, %c0_5, %c0_6, %c0_7], %47 {strides = array<i32>} : memref<1x1x8x8xf32, #tpu.memory_space<vmem>>, vector<1x1x8x8xf32>,
    return
  }
  func.func @transform_0(%arg0: i32) -> (i32, i32, i32, i32) {
    %c0_i32 = arith.constant 0 : i32
    %c0_i32_0 = arith.constant 0 : i32
    %c0_i32_1 = arith.constant 0 : i32
    %c0_i32_2 = arith.constant 0 : i32
    return %arg0, %c0_i32, %c0_i32_0, %c0_i32_1 : i32, i32, i32, i32
  }
  func.func @transform_1(%arg0: i32) -> (i32, i32, i32, i32) {
    %c0_i32 = arith.constant 0 : i32
    %c0_i32_0 = arith.constant 0 : i32
    %c0_i32_1 = arith.constant 0 : i32
    %c0_i32_2 = arith.constant 0 : i32
    return %arg0, %c0_i32, %c0_i32_0, %c0_i32_1 : i32, i32, i32, i32
  }
}

</mosaic_0001>

<bundles_post_ra>
// kernel: tpu_custom_call.1
= control target key start
LH: loop header
LB: loop body
LE: loop exit
PB: predicated region body
PF: predicated region fallthrough
CT: control target
= control target key end

     0   :  { %6 = vsyncpa [#allocation3], 0  ;;  %s764_s0 = inlined_call_operand.hbm [shape: f32[2,1,16,16], index: 0, kind: input, shape index: {}]   ;;  %s765_s1 = inlined_call_operand.hbm [shape: f32[2,1,8,8], index: 1, kind: output, shape index: {}]  }
   0x1   :  { %8 = vsyncpa [#allocation3 + $0x1], 0 }
   0x2   :  { %9 = vsyncpa [#allocation4], 0 }
   0x3   :  { %11 = vsyncpa [#allocation4 + $0x1], 0  ;;  %s569_s6 = smov 0   ;;  %s571_s7 = smov 0  }
   0x4   :  { %s573_s8 = smov 0   ;;  %s575_s9 = smov 0  }
   0x5 LB: > { %s590_s10 = sadd.s32 4294967295, %s548_s9   ;;  %s385_s11 = sadd.s32 4294967294, %s548_s9   ;;  %s548_s9 = sphi %s575_s9, %s778_s9   ;;  %s544_s8 = sphi %s573_s8, %s777_s8   ;;  %s540_s7 = sphi %s571_s7, %s776_s7   ;;  %s536_s6 = sphi %s569_s6, %s775_s6  }
   0x6   : > { %s594_s12 = sadd.s32 1, %s548_s9   ;;  %s24_s13 = sadd.s32 1, %s544_s8 }
   0x7   : > { %s21_s14 = ssub.s32 %s548_s9, %s594_s12  ;;  %p31_p0 = scmp.ne.s32.totalorder %s544_s8, %s540_s7 }
   0x8   : > { %p22_p1 = scmp.eq.s32.totalorder %s21_s14, 0  ;;  %p32_p2 = scmp.eq.s32.totalorder %s548_s9, 0 }
   0x9   : > { %p37_p3 = scmp.ne.s32.totalorder %s540_s7, %s536_s6  ;;  %p38_p4 = scmp.eq.s32.totalorder %s590_s10, 0 }
   0xa   : > { %s606_s15 = scalar_select %p22_p1, %s544_s8, %s24_s13  }
   0xb   : > { %p608_p5 = por %p32_p2, %p31_p0  ;;  %p612_p6 = por %p38_p4, %p37_p3 }
   0xc   : > { %p61_p7 = scmp.eq.s32.totalorder %s590_s10, 1  ;;  %p67_p8 = scmp.eq.s32.totalorder %s385_s11, 1 }
   0xd   : > { %p411_p10 = scmp.lt.s32.totalorder %s548_s9, 2  ;;  %s87_s20 = sand.u32 1, %s544_s8  }
   0xe   : > { %p619_p11 = por %p61_p7, %p31_p0  ;;  %p623_p12 = por %p67_p8, %p37_p3 }
   0xf   : > { %s398_s21 = sshll.u32 %s548_s9, 8  ;;  %s388_s22 = sshll.u32 %s87_s20, 4 }
  0x10   : > { %s769_s18 = scalar_select %p619_p11, 1, 0 }
  0x11   : > { %s770_s19 = scalar_select %p623_p12, 1, 0 }
  0x12   : > { %s632_s25 = scalar_lea.hbm %s764_s0, %s398_s21  ;;  %s91_s26 = scalar_lea.vmem [#allocation2], %s388_s22 }
  0x13   : > { %s98_s27 = sshll.u32 %s91_s26, 4  ;;  %p636_p13 = pnand %p411_p10, %p608_p5  ;;  %s640_s27 = int_to_ptr.vmem [resolvable:$true] %s98_s27 }
  0x14   : > { %s642_s29 = scalar_lea.sflag [#allocation3], %s87_s20  ;;  %s452_s30 = scalar_lea.hbm %s632_s25, 256 }
  0x15   : > { %p453_p0 = scmp.ne.s32.totalorder %s632_s25, %s452_s30  ;;  %p454_p1 = pneg %p636_p13 }
  0x16   : > { %s457_s4 = scalar_lea.hbm %s764_s0, 512  ;;  %p458_p4 = scmp.lt.u32.totalorder %s632_s25, %s764_s0 }
  0x17   : > { %p455_p2 = pnand %p454_p1, %p453_p0  ;;  %p459_p5 = scmp.lt.u32.totalorder %s457_s4, %s452_s30 }
  0x18   : > { %p461_p8 = scmp.lt.u32.totalorder %s452_s30, %s632_s25 }
  0x19   : > { %p456_p3 = pneg %p455_p2  ;;  %p460_p7 = por %p459_p5, %p458_p4 }
  0x1b   : > { %p462_p10 = por %p461_p8, %p460_p7 }
  0x1d   : > { %p463_p9 = pnand %p462_p10, %p456_p3 }
  0x1f   : > { %466 = shalt.err (!%p463_p9)
}
  0x20   : > { %s467_s13 = scalar_lea.vmem %s640_s27, 256  ;;  %s550_s14 = smov [#allocation2]  }
  0x21   : > { %p468_p0 = scmp.ne.s32.totalorder %s640_s27, %s467_s13  ;;  %s472_s16 = sshll.u32 %s550_s14, 4  ;;  %s473_s16 = int_to_ptr.vmem [resolvable:$false] %s472_s16 }
  0x22   : > { %s474_s20 = scalar_lea.vmem %s473_s16, 512  ;;  %p475_p11 = scmp.lt.s32.totalorder %s640_s27, %s473_s16 }
  0x23   : > { %p470_p2 = pnand %p468_p0, %p454_p1  ;;  %p476_p4 = scmp.lt.s32.totalorder %s474_s20, %s467_s13 }
  0x25   : > { %p471_p12 = pneg %p470_p2  ;;  %p477_p5 = por %p476_p4, %p475_p11 }
  0x27   : > { %p478_p7 = pnand %p477_p5, %p471_p12 }
  0x29   : > { %481 = shalt.err (!%p478_p7)
}
  0x2a   : > { %s551_s21 = smov 128   ;;  %s552_s22 = smov 8  }
  0x2b   : > { %406 = dma.hbm_to_vmem [thread:$0]  (!%p636_p13), %s632_s25, 256, %s640_s27, %s642_s29, %s551_s21, %s551_s21, %s552_s22  }
  0x2c   : > { %p391_p9 = scmp.ge.s32.totalorder %s548_s9, 1  ;;  %p106_p1 = scmp.lt.s32.totalorder %s548_s9, 3 }
  0x2e   : > { %p107_p3 = pnand %p391_p9, %p106_p1 }
  0x2f   : > { %s673_s23 = sand.u32 (!%p107_p3), 1, %s540_s7  }
  0x30   : > { %110 = sbr.rel (%p107_p3) target bundleno = 592 (0x250), region = 24  ;;  %s392_s24 = sshll.u32 (!%p107_p3), %s673_s23, 4 }
  0x31   : > { %s113_s26 = scalar_lea.sflag (!%p107_p3), [#allocation3], %s673_s23  ;;  %s116_s30 = scalar_lea.vmem (!%p107_p3), [#allocation2], %s392_s24 }
  0x37   : > { %527 = dma.done.wait (%p612_p6), %s113_s26, 256  }
  0x38   : > { %529 = vsyncadd (%p612_p6), %s113_s26, 4294967040  ;;  %v681_v0 = vld [vmem:[%s116_s30] sm:$0xff]  ;;  %s553_s25 = smov 126   ;;  %s554_s27 = smov 127   ;;  %v136_v1 = vld [vmem:[%s116_s30 + $0x8] sm:$0xff]  ;;  %vm173_vm0 = vcmask 1046528  }
  0x39   : > { %147 = vrot.lane.b32.xlu1 %v681_v0, %s553_s25  ;;  %139 = vrot.lane.b32.xlu0 %v681_v0, %s554_s27  ;;  %s555_s28 = smov 125   ;;  %s556_s17 = smov 124   ;;  %vm181_vm1 = vcmask 1045504   ;;  %vm189_vm2 = vcmask 1044480   ;;  %vm197_vm3 = vcmask 1043456   ;;  %vm209_vm4 = vcmask 1041408  }
  0x3a   : > { %s557_s29 = smov 2   ;;  %s393_s2 = sshll.u32 %s673_s23, 3  ;;  %vm299_vm5 = vcmask 58368   ;;  %vm297_vm6 = vcmask 64514  }
  0x3b   : > { %s395_s3 = sshll.u32 %s590_s10, 7  ;;  %s134_s4 = scalar_lea.vmem [#allocation5], %s393_s2 }
  0x3c   : > { %s315_s5 = sshll.u32 %s134_s4, 4  ;;  %s720_s14 = scalar_lea.hbm %s765_s1, %s395_s3  ;;  %s722_s5 = int_to_ptr.vmem [resolvable:$true] %s315_s5 }
  0x3d   : > { %149 = vrot.lane.b32.xlu1 %v136_v1, %s553_s25  ;;  %141 = vrot.lane.b32.xlu0 %v136_v1, %s554_s27  ;;  %s302_s16 = scalar_lea.sflag [#allocation4], %s673_s23  ;;  %s482_s10 = scalar_lea.vmem %s722_s5, 128 }
  0x3e   : > { %p483_p6 = scmp.ne.s32.totalorder %s722_s5, %s482_s10  ;;  %p772_p11 = scmp.ne.s32.totalorder %s769_s18, 0 }
  0x3f   : > { %s558_s20 = smov [#allocation5]  }
  0x40   : > { %p484_p12 = pnand %p483_p6, %p772_p11  ;;  %s486_s21 = sshll.u32 %s558_s20, 4  ;;  %s487_s21 = int_to_ptr.vmem [resolvable:$false] %s486_s21 }
  0x41   : > { %157 = vrot.lane.b32.xlu1 %v136_v1, %s555_s28  ;;  %155 = vrot.lane.b32.xlu0 %v681_v0, %s555_s28  ;;  %s488_s22 = scalar_lea.vmem %s487_s21, 256  ;;  %p489_p8 = scmp.lt.s32.totalorder %s722_s5, %s487_s21 }
  0x42   : > { %p485_p13 = pneg %p484_p12  ;;  %p490_p10 = scmp.lt.s32.totalorder %s488_s22, %s482_s10 }
  0x44   : > { %p491_p0 = por %p490_p10, %p489_p8 }
  0x45   : > { %165 = vrot.lane.b32.xlu1 %v136_v1, %s556_s17  ;;  %163 = vrot.lane.b32.xlu0 %v681_v0, %s556_s17 }
  0x46   : > { %p492_p2 = pnand %p491_p0, %p485_p13 }
  0xab   : > { %v148_v2 = vpop.permute.xlu1 %147  ;;  %v140_v3 = vpop.permute.xlu0 %139 }
  0xac   : > { %v145_v6 = vadd.f32 %v140_v3, %v681_v0 }
  0xae   : > { %v153_v11 = vadd.f32 %v148_v2, %v145_v6 }
  0xaf   : > { %v150_v4 = vpop.permute.xlu1 %149  ;;  %v142_v5 = vpop.permute.xlu0 %141 }
  0xb0   : > { %v146_v7 = vadd.f32 %v142_v5, %v136_v1 }
  0xb2   : > { %v154_v8 = vadd.f32 %v150_v4, %v146_v7 }
  0xb3   : > { %v158_v9 = vpop.permute.xlu1 %157  ;;  %v156_v10 = vpop.permute.xlu0 %155 }
  0xb4   : > { %v162_v12 = vadd.f32 %v158_v9, %v154_v8  ;;  %v161_v13 = vadd.f32 %v156_v10, %v153_v11 }
  0xb7   : > { %v166_v14 = vpop.permute.xlu1 %165  ;;  %v164_v15 = vpop.permute.xlu0 %163 }
  0xb8   : > { %v170_v16 = vadd.f32 %v166_v14, %v162_v12  ;;  %v169_v17 = vadd.f32 %v164_v15, %v161_v13 }
  0xba   : > { %v175_v18 = vrot.slane %v170_v16, 1  ;;  %v183_v19 = vrot.slane %v170_v16, 2  ;;  %v174_v20 = vrot.slane %v169_v17, 1  ;;  %v182_v21 = vrot.slane %v169_v17, 2 }
  0xbb   : > { %v190_v24 = vrot.slane %v169_v17, 3  ;;  %v191_v25 = vrot.slane %v170_v16, 3  ;;  %v198_v28 = vrot.slane %v169_v17, 4  ;;  %v199_v29 = vrot.slane %v170_v16, 4 }
  0xbc   : > { %v180_v22 = vadd.f32 %v175_v18, %v170_v16  ;;  %v176_v23 = vsel %vm173_vm0, %v174_v20, %v175_v18  ;;  %v184_v27 = vsel %vm181_vm1, %v182_v21, %v183_v19 }
  0xbd   : > { %v179_v26 = vadd.f32 %v176_v23, %v169_v17  ;;  %v192_v32 = vsel %vm189_vm2, %v190_v24, %v191_v25  ;;  %v200_v35 = vsel %vm197_vm3, %v198_v28, %v199_v29 }
  0xbe   : > { %v188_v30 = vadd.f32 %v183_v19, %v180_v22 }
  0xbf   : > { %v187_v31 = vadd.f32 %v184_v27, %v179_v26 }
  0xc0   : > { %v196_v33 = vadd.f32 %v191_v25, %v188_v30 }
  0xc1   : > { %v195_v34 = vadd.f32 %v192_v32, %v187_v31 }
  0xc2   : > { %v204_v36 = vadd.f32 %v199_v29, %v196_v33 }
  0xc3   : > { %v203_v37 = vadd.f32 %v200_v35, %v195_v34 }
  0xc4   : > { %v206_v38 = vmul.f32 0.04, %v204_v36 }
  0xc5   : > { %v205_v39 = vmul.f32 0.04, %v203_v37 }
  0xc6   : > { %v211_v40 = vrot.slane %v206_v38, 6 }
  0xc7   : > { %v210_v41 = vrot.slane %v205_v39, 6 }
  0xc9   : > { %213 = vrot.lane.b32.xlu0 %v210_v41, %s557_s29  ;;  %v212_v42 = vsel %vm209_vm4, %v210_v41, %v211_v40 }
  0xca   : > { %215 = vrot.lane.b32.xlu1 %v212_v42, %s557_s29 }
 0x13b   : > { %v214_v43 = vpop.permute.xlu0 %213 }
 0x13c   : > { %v219_v44 = vsub.f32 %v681_v0, %v214_v43  ;;  %v216_v45 = vpop.permute.xlu1 %215 }
 0x13d   : > { %v220_v46 = vsub.f32 %v136_v1, %v216_v45 }
 0x13e   : > { %v221_v47 = vmul.f32 %v219_v44, %v219_v44 }
 0x13f   : > { %v222_v48 = vmul.f32 %v220_v46, %v220_v46 }
 0x140   : > { %225 = vrot.lane.b32.xlu0 %v221_v47, %s554_s27 }
 0x141   : > { %227 = vrot.lane.b32.xlu1 %v222_v48, %s554_s27 }
 0x144   : > { %233 = vrot.lane.b32.xlu0 %v221_v47, %s553_s25 }
 0x145   : > { %235 = vrot.lane.b32.xlu1 %v222_v48, %s553_s25 }
 0x148   : > { %241 = vrot.lane.b32.xlu0 %v221_v47, %s555_s28 }
 0x149   : > { %243 = vrot.lane.b32.xlu1 %v222_v48, %s555_s28 }
 0x14c   : > { %249 = vrot.lane.b32.xlu0 %v221_v47, %s556_s17 }
 0x14d   : > { %251 = vrot.lane.b32.xlu1 %v222_v48, %s556_s17 }
 0x1b2   : > { %v226_v49 = vpop.permute.xlu0 %225 }
 0x1b3   : > { %v228_v50 = vpop.permute.xlu1 %227  ;;  %v231_v53 = vadd.f32 %v226_v49, %v221_v47 }
 0x1b4   : > { %v232_v54 = vadd.f32 %v228_v50, %v222_v48 }
 0x1b6   : > { %v234_v51 = vpop.permute.xlu0 %233 }
 0x1b7   : > { %v236_v52 = vpop.permute.xlu1 %235  ;;  %v239_v56 = vadd.f32 %v234_v51, %v231_v53 }
 0x1b8   : > { %v240_v58 = vadd.f32 %v236_v52, %v232_v54 }
 0x1ba   : > { %v242_v55 = vpop.permute.xlu0 %241 }
 0x1bb   : > { %v244_v57 = vpop.permute.xlu1 %243  ;;  %v247_v59 = vadd.f32 %v242_v55, %v239_v56 }
 0x1bc   : > { %v248_v60 = vadd.f32 %v244_v57, %v240_v58 }
 0x1be   : > { %v250_v61 = vpop.permute.xlu0 %249 }
 0x1bf   : > { %v255_v62 = vadd.f32 %v250_v61, %v247_v59  ;;  %v252_v63 = vpop.permute.xlu1 %251 }
 0x1c0   : > { %v256_v0 = vadd.f32 %v252_v63, %v248_v60 }
 0x1c1   : > { %v259_v1 = vrot.slane %v255_v62, 1  ;;  %v266_v2 = vrot.slane %v255_v62, 2  ;;  %v273_v8 = vrot.slane %v255_v62, 3  ;;  %v280_v13 = vrot.slane %v255_v62, 4 }
 0x1c2   : > { %v260_v3 = vrot.slane %v256_v0, 1  ;;  %v267_v4 = vrot.slane %v256_v0, 2  ;;  %v274_v6 = vrot.slane %v256_v0, 3  ;;  %v281_v11 = vrot.slane %v256_v0, 4 }
 0x1c4   : > { %v265_v5 = vadd.f32 %v260_v3, %v256_v0  ;;  %v261_v7 = vsel %vm173_vm0, %v259_v1, %v260_v3  ;;  %v268_v12 = vsel %vm181_vm1, %v266_v2, %v267_v4  ;;  %v275_v16 = vsel %vm189_vm2, %v273_v8, %v274_v6 }
 0x1c5   : > { %v264_v9 = vadd.f32 %v261_v7, %v255_v62  ;;  %v282_v19 = vsel %vm197_vm3, %v280_v13, %v281_v11 }
 0x1c6   : > { %v272_v10 = vadd.f32 %v267_v4, %v265_v5 }
 0x1c7   : > { %v271_v14 = vadd.f32 %v268_v12, %v264_v9 }
 0x1c8   : > { %v279_v15 = vadd.f32 %v274_v6, %v272_v10 }
 0x1c9   : > { %v278_v17 = vadd.f32 %v275_v16, %v271_v14 }
 0x1ca   : > { %v286_v18 = vadd.f32 %v281_v11, %v279_v15 }
 0x1cb   : > { %v285_v20 = vadd.f32 %v282_v19, %v278_v17 }
 0x1cc   : > { %v288_v21 = vmul.f32 0.04, %v286_v18 }
 0x1cd   : > { %v287_v22 = vmul.f32 0.04, %v285_v20 }
 0x1ce   : > { %293 = vrot.lane.b32.xlu1 %v288_v21, %s553_s25 }
 0x1cf   : > { %291 = vrot.lane.b32.xlu0 %v287_v22, %s553_s25 }
 0x240   : > { %v294_v23 = vpop.permute.xlu1 %293 }
 0x241   : > { %300 = vst.msk [vmem:[%s134_s4 + $0x6] sm:$0x3] %vm299_vm5, %v294_v23  ;;  %v292_v24 = vpop.permute.xlu0 %291 }
 0x242   : > { %298 = vst.msk [vmem:[%s134_s4 - $0x2] sm:$0xfc] %vm297_vm6, %v292_v24 }
 0x243   : > { %495 = shalt.err (!%p492_p2)
}
 0x244   : > { %s496_s23 = scalar_lea.hbm %s720_s14, 128  ;;  %s500_s30 = scalar_lea.hbm %s765_s1, 256 }
 0x245   : > { %p497_p4 = scmp.ne.s32.totalorder %s720_s14, %s496_s23  ;;  %p501_p9 = scmp.lt.u32.totalorder %s720_s14, %s765_s1 }
 0x246   : > { %p502_p1 = scmp.lt.u32.totalorder %s500_s30, %s496_s23  ;;  %p504_p6 = scmp.lt.u32.totalorder %s496_s23, %s720_s14 }
 0x247   : > { %p498_p5 = pnand %p497_p4, %p772_p11 }
 0x248   : > { %p503_p3 = por %p502_p1, %p501_p9 }
 0x249   : > { %p499_p7 = pneg %p498_p5 }
 0x24a   : > { %p505_p12 = por %p504_p6, %p503_p3 }
 0x24c   : > { %p506_p13 = pnand %p505_p12, %p499_p7 }
 0x24e   : > { %509 = shalt.err (!%p506_p13)
}
 0x24f   : > { %401 = dma.vmem_to_hbm [thread:$0]  (%p772_p11), %s722_s5, 128, %s720_s14, %s302_s16  }
 0x250 PF: > { %s327_s28 = sand.u32 1, %s536_s6   ;;  %p773_p8 = scmp.ne.s32.totalorder %s770_s19, 0 }
 0x251   : > { %p774_p10 = scmp.ge.s32.totalorder %s548_s9, 2  ;;  %s328_s17 = scalar_lea.sflag [#allocation4], %s327_s28 }
 0x253   : > { %p408_p0 = pnand %p774_p10, %p773_p8 }
 0x255   : > { %531 = dma.done.wait (!%p408_p0), %s328_s17, 128  }
 0x256   : > { %533 = vsyncadd (!%p408_p0), %s328_s17, 4294967168  ;;  %p14_p2 = scmp.ge.s32.totalorder %s594_s12, 4   ;;  %s775_s6 = smov %s540_s7 }
 0x257   : > { %s776_s7 = smov %s544_s8  ;;  %s777_s8 = smov %s606_s15 }
 0x258   : > { %s778_s9 = smov %s594_s12  ;;  %16 = sbr.rel (!%p14_p2) target bundleno = 5 (0x5), region = 69 }
 0x25f   :  { %333 = vsyncpa [#allocation3], 1 }
 0x260   :  { %335 = vsyncpa [#allocation3 + $0x1], 1 }
 0x261   :  { %336 = vsyncpa [#allocation4], 1 }
 0x262   :  { %338 = vsyncpa [#allocation4 + $0x1], 1 }

</bundles_post_ra>
